<compile_context>
chip_gen: v7x
topology: tpu7x:2x2x1
jax: 0.10.0
libtpu: 0.0.40
codegen_flags: <defaults>
</compile_context>

<pallas_src>
import jax
import jax.numpy as jnp
from jax.experimental import pallas as pl
from jax.experimental.pallas import tpu as pltpu

_LANE = 128
_SUBLANE = 8


def _round_up(n, m):
    return ((n + m - 1) // m) * m


def _pad2d(a, rows, cols):
    r, c = a.shape
    if r == rows and c == cols:
        return a
    return jnp.zeros((rows, cols), a.dtype).at[:r, :c].set(a)


def bpnet_kernel(x_ref, w1_ref, b1_ref, w2_ref, b2_ref, w3_ref, b3_ref, o_ref):
    # Fused hot path: three MXU matmuls (f32 accumulation) + VPU ReLUs, all in
    # VMEM. Compute dtype of the dots follows the weight dtype (f32 or bf16);
    # x is cast in-kernel so the wrapper never materializes a bf16 copy in HBM.
    cd = w1_ref.dtype
    x = x_ref[...].astype(cd)
    h1 = jnp.dot(x, w1_ref[...], preferred_element_type=jnp.float32) + b1_ref[...]
    h1 = jnp.maximum(h1, 0.0).astype(cd)
    h2 = jnp.dot(h1, w2_ref[...], preferred_element_type=jnp.float32) + b2_ref[...]
    h2 = jnp.maximum(h2, 0.0).astype(cd)
    out = jnp.dot(h2, w3_ref[...], preferred_element_type=jnp.float32) + b3_ref[...]
    o_ref[...] = out.astype(o_ref.dtype)


def bpnet_forward(x, params, *, batch_tile=None, use_bf16=False,
                  pad_output_lanes=False):
    """x: [B, D0]. params: (w1, b1, w2, b2, w3, b3) with [D_in, D_out] weights.

    use_bf16: cast weights + in-kernel activations to bf16 (f32 accumulation) —
      the MXU fast path; recommended default on v5e when tolerance allows.
    pad_output_lanes: write a 128-lane-padded output (unmasked vst) and slice;
      only clearly wins on v5e for narrow D3 — benchmark per generation.
    """
    w1, b1, w2, b2, w3, b3 = params
    B, D0 = x.shape
    D1, D2, D3 = w1.shape[1], w2.shape[1], w3.shape[1]
    out_dtype = x.dtype
    compute_dtype = jnp.bfloat16 if use_bf16 else x.dtype
    cd_bytes = jnp.dtype(compute_dtype).itemsize
    # bf16 packs two rows per sublane -> 16-row alignment keeps tiles packed.
    sublane_align = 16 if jnp.dtype(compute_dtype) == jnp.bfloat16 else _SUBLANE

    # Hidden dims padded to full 128-lane tiles (weights only; zero pad exact).
    D1p, D2p = _round_up(D1, _LANE), _round_up(D2, _LANE)
    D3o = _round_up(D3, _LANE) if pad_output_lanes else D3

    # --- hardware query (generation-aware VMEM / tiling) ---------------------
    try:
        vmem_cap = int(pltpu.get_tpu_info().vmem_capacity_bytes)
    except Exception:
        vmem_cap = 64 * 1024 * 1024  # conservative (v7x-sized) fallback

    # --- adaptive batch tiling ------------------------------------------------
    if batch_tile is None:
        if B <= 64:
            # Tiny problems: one grid step (block == full array dims is always
            # legal) — launch-bound regime, no pipeline churn.
            batch_tile = B
        else:
            # >= 2 grid steps so both v7x TensorCores get "parallel" work; fat
            # tiles (512 on 128 MiB v5e/v6e, 256 on 64 MiB v7x) for streaming B.
            big = 512 if vmem_cap >= 96 * 1024 * 1024 else 256
            batch_tile = min(big, _round_up(pl.cdiv(B, 2), sublane_align))
    elif batch_tile != B:
        batch_tile = _round_up(batch_tile, sublane_align)
    grid = (pl.cdiv(B, batch_tile),)
    # Partial last batch block: Pallas drops the out-of-bounds rows on writeback
    # (row-wise compute, so garbage rows never contaminate valid rows).

    # --- pad weights/biases only (small, constant; pre-pad once in production) -
    w1p = _pad2d(w1, D0, D1p).astype(compute_dtype)
    w2p = _pad2d(w2, D1p, D2p).astype(compute_dtype)
    w3p = _pad2d(w3, D2p, D3o).astype(compute_dtype)
    b1p = _pad2d(b1, 1, D1p)   # biases stay f32 (added post-accumulation)
    b2p = _pad2d(b2, 1, D2p)
    b3p = _pad2d(b3, 1, D3o)

    # --- cost estimate on LOGICAL dims (scheduler hint) -----------------------
    flops = 2 * B * (D0 * D1 + D1 * D2 + D2 * D3)
    bytes_accessed = (
        B * D0 * jnp.dtype(x.dtype).itemsize
        + (D0 * D1 + D1 * D2 + D2 * D3) * cd_bytes
        + (D1 + D2 + D3) * 4
        + B * D3 * jnp.dtype(out_dtype).itemsize
    )
    cost = pl.CostEstimate(flops=flops, transcendentals=0,
                           bytes_accessed=bytes_accessed)

    # --- VMEM budget: double-buffered x/out tiles, single-buffered weights,
    #     f32 accumulators + compute-dtype activations. Clamp to ~80% of the
    #     physical VMEM (leaves Mosaic scratch/spill headroom on v7x's 64 MiB). -
    vmem_needed = (
        2 * batch_tile * D0 * jnp.dtype(x.dtype).itemsize        # x tile (x2 buf)
        + 2 * batch_tile * D3o * jnp.dtype(out_dtype).itemsize   # out tile (x2 buf)
        + (D0 * D1p + D1p * D2p + D2p * D3o) * cd_bytes          # weights (x1 buf)
        + (D1p + D2p + D3o) * 4                                  # biases (x1 buf)
        + batch_tile * (D1p + D2p + D3o) * 4                     # f32 accumulators
        + batch_tile * (D1p + D2p) * cd_bytes                    # ReLU activations
    )
    vmem_ceiling = int(vmem_cap * 0.8)
    vmem_limit = min(vmem_ceiling, max(32 * 1024 * 1024, int(vmem_needed * 1.5)))

    # Constant-index operands: single-buffered (double-buffering buys nothing).
    const_buf = dict(pipeline_mode=pl.Buffered(1))

    out = pl.pallas_call(
        bpnet_kernel,
        out_shape=jax.ShapeDtypeStruct((B, D3o), out_dtype),
        grid_spec=pltpu.PrefetchScalarGridSpec(
            num_scalar_prefetch=0,
            grid=grid,
            in_specs=[
                pl.BlockSpec((batch_tile, D0), lambda i: (i, 0)),            # x tile
                pl.BlockSpec((D0, D1p), lambda i: (0, 0), **const_buf),      # w1
                pl.BlockSpec((1, D1p), lambda i: (0, 0), **const_buf),       # b1
                pl.BlockSpec((D1p, D2p), lambda i: (0, 0), **const_buf),     # w2
                pl.BlockSpec((1, D2p), lambda i: (0, 0), **const_buf),       # b2
                pl.BlockSpec((D2p, D3o), lambda i: (0, 0), **const_buf),     # w3
                pl.BlockSpec((1, D3o), lambda i: (0, 0), **const_buf),       # b3
            ],
            out_specs=pl.BlockSpec((batch_tile, D3o), lambda i: (i, 0)),
        ),
        compiler_params=pltpu.CompilerParams(
            dimension_semantics=("parallel",),
            vmem_limit_bytes=vmem_limit,
        ),
        cost_estimate=cost,
    )(x, w1p, b1p, w2p, b2p, w3p, b3p)

    return out[:, :D3] if pad_output_lanes else out


def init_params(key, net_size):
    """Deterministic synthetic init, shapes matching BpNet's nn.Linear layers."""
    d0, d1, d2, d3 = net_size
    ks = jax.random.split(key, 6)

    def lin(kw, kb, din, dout):
        bound = 1.0 / jnp.sqrt(din)
        w = jax.random.uniform(kw, (din, dout), jnp.float32, -bound, bound)
        b = jax.random.uniform(kb, (1, dout), jnp.float32, -bound, bound)
        return w, b

    w1, b1 = lin(ks[0], ks[1], d0, d1)
    w2, b2 = lin(ks[2], ks[3], d1, d2)
    w3, b3 = lin(ks[4], ks[5], d2, d3)
    return (w1, b1, w2, b2, w3, b3)


def reference_forward(x, params):
    w1, b1, w2, b2, w3, b3 = params
    hi = jax.lax.Precision.HIGHEST
    h1 = jnp.maximum(jnp.dot(x, w1, precision=hi) + b1, 0.0)
    h2 = jnp.maximum(jnp.dot(h1, w2, precision=hi) + b2, 0.0)
    return jnp.dot(h2, w3, precision=hi) + b3


if __name__ == "__main__":
    # TODO(synk): torch-style save()/load() checkpoint I/O is host-side and has
    # no Pallas equivalent; params are synthesized in-script instead.
    net_size = [32, 64, 48, 16]   # [D0, D1, D2, D3], as in BpNet(net_size)
    batch = 16

    key = jax.random.PRNGKey(0)
    k_x, k_p = jax.random.split(key)
    x = jax.random.normal(k_x, (batch, net_size[0]), jnp.float32)
    params = init_params(k_p, net_size)

    # f32 path, single grid step, unpadded output lanes.
    out = jax.block_until_ready(bpnet_forward(x, params))
    ref = reference_forward(x, params)
    assert out.shape == (batch, net_size[3])
    assert jnp.allclose(out, ref, atol=1e-4, rtol=1e-4), "mismatch vs JAX reference (f32)"

    # bf16 weights/activations path (v6e/v7x MXU fast path), f32 accumulation.
    out_bf16 = jax.block_until_ready(bpnet_forward(x, params, use_bf16=True))
    assert jnp.allclose(out_bf16, ref, atol=1e-1, rtol=5e-2), "mismatch vs JAX reference (bf16)"

    # Multi-step grid (>=2 'parallel' steps) with a partial last batch block.
    x_big = jax.random.normal(jax.random.PRNGKey(1), (300, net_size[0]), jnp.float32)
    out_big = jax.block_until_ready(bpnet_forward(x_big, params))
    assert out_big.shape == (300, net_size[3])
    assert jnp.allclose(out_big, reference_forward(x_big, params), atol=1e-4, rtol=1e-4)

    # Lane-dense-store variant (128-padded output + slice), for v5e benchmarking.
    out_pad = jax.block_until_ready(bpnet_forward(x, params, pad_output_lanes=True))
    assert jnp.allclose(out_pad, ref, atol=1e-4, rtol=1e-4)

    # Odd small batch: block == full array dims, no alignment/padding needed.
    x_odd = jax.random.normal(jax.random.PRNGKey(2), (10, net_size[0]), jnp.float32)
    out_odd = jax.block_until_ready(bpnet_forward(x_odd, params))
    assert out_odd.shape == (10, net_size[3])
    assert jnp.allclose(out_odd, reference_forward(x_odd, params), atol=1e-4, rtol=1e-4)

    print("KERNEL_OK")
</pallas_src>

<mosaic_0001>
module attributes {stable_mosaic.version = 11 : i64} {
  func.func @bpnet_kernel(%arg0: i32, %arg1: memref<16x32xf32, #tpu.memory_space<vmem>>, %arg2: memref<32x128xf32, #tpu.memory_space<vmem>>, %arg3: memref<1x128xf32, #tpu.memory_space<vmem>>, %arg4: memref<128x128xf32, #tpu.memory_space<vmem>>, %arg5: memref<1x128xf32, #tpu.memory_space<vmem>>, %arg6: memref<128x16xf32, #tpu.memory_space<vmem>>, %arg7: memref<1x16xf32, #tpu.memory_space<vmem>>, %arg8: memref<16x16xf32, #tpu.memory_space<vmem>>) attributes {dimension_semantics = [#tpu.dimension_semantics<parallel>], iteration_bounds = array<i64: 1>, scalar_prefetch = 0 : i64, scratch_operands = 0 : i64, tpu.core_type = #tpu.core_type<tc>, window_params = [{transform_indices = @transform_0, window_bounds = array<i64: 16, 32>}, {pipeline_mode = #tpu.pipeline_mode<synchronous>, transform_indices = @transform_1, window_bounds = array<i64: 32, 128>}, {pipeline_mode = #tpu.pipeline_mode<synchronous>, transform_indices = @transform_2, window_bounds = array<i64: 1, 128>}, {pipeline_mode = #tpu.pipeline_mode<synchronous>, transform_indices = @transform_3, window_bounds = array<i64: 128, 128>}, {pipeline_mode = #tpu.pipeline_mode<synchronous>, transform_indices = @transform_4, window_bounds = array<i64: 1, 128>}, {pipeline_mode = #tpu.pipeline_mode<synchronous>, transform_indices = @transform_5, window_bounds = array<i64: 128, 16>}, {pipeline_mode = #tpu.pipeline_mode<synchronous>, transform_indices = @transform_6, window_bounds = array<i64: 1, 16>}, {transform_indices = @transform_7, window_bounds = array<i64: 16, 16>}]} {
    %c0 = arith.constant 0 : index
    %c0_0 = arith.constant 0 : index
    %0 = vector.load %arg1[%c0, %c0_0] : memref<16x32xf32, #tpu.memory_space<vmem>>, vector<16x32xf32>
    %c0_1 = arith.constant 0 : index
    %c0_2 = arith.constant 0 : index
    %1 = vector.load %arg2[%c0_1, %c0_2] : memref<32x128xf32, #tpu.memory_space<vmem>>, vector<32x128xf32>
    %cst = arith.constant dense<0.000000e+00> : vector<16x128xf32>
    %2 = tpu.matmul %0, %1, %cst {dimension_numbers = #tpu.dot_dimension_numbers<[1], [0], [0], [1], [0, 0, 1, 1], [], []>} : vector<16x32xf32>, vector<32x128xf32>, vector<16x128xf32> -> vector<16x128xf32>
    %c0_3 = arith.constant 0 : index
    %c0_4 = arith.constant 0 : index
    %3 = vector.load %arg3[%c0_3, %c0_4] : memref<1x128xf32, #tpu.memory_space<vmem>>, vector<1x128xf32>
    %4 = vector.broadcast %3 : vector<1x128xf32> to vector<16x128xf32>
    %5 = arith.addf %2, %4 : vector<16x128xf32>
    %cst_5 = arith.constant 0.000000e+00 : f32
    %6 = vector.broadcast %cst_5 : f32 to vector<16x128xf32>
    %7 = arith.maximumf %5, %6 : vector<16x128xf32>
    %c0_6 = arith.constant 0 : index
    %c0_7 = arith.constant 0 : index
    %8 = vector.load %arg4[%c0_6, %c0_7] : memref<128x128xf32, #tpu.memory_space<vmem>>, vector<128x128xf32>
    %cst_8 = arith.constant dense<0.000000e+00> : vector<16x128xf32>
    %9 = tpu.matmul %7, %8, %cst_8 {dimension_numbers = #tpu.dot_dimension_numbers<[1], [0], [0], [1], [0, 0, 1, 1], [], []>} : vector<16x128xf32>, vector<128x128xf32>, vector<16x128xf32> -> vector<16x128xf32>
    %c0_9 = arith.constant 0 : index
    %c0_10 = arith.constant 0 : index
    %10 = vector.load %arg5[%c0_9, %c0_10] : memref<1x128xf32, #tpu.memory_space<vmem>>, vector<1x128xf32>
    %11 = vector.broadcast %10 : vector<1x128xf32> to vector<16x128xf32>
    %12 = arith.addf %9, %11 : vector<16x128xf32>
    %cst_11 = arith.constant 0.000000e+00 : f32
    %13 = vector.broadcast %cst_11 : f32 to vector<16x128xf32>
    %14 = arith.maximumf %12, %13 : vector<16x128xf32>
    %c0_12 = arith.constant 0 : index
    %c0_13 = arith.constant 0 : index
    %15 = vector.load %arg6[%c0_12, %c0_13] : memref<128x16xf32, #tpu.memory_space<vmem>>, vector<128x16xf32>
    %cst_14 = arith.constant dense<0.000000e+00> : vector<16x16xf32>
    %16 = tpu.matmul %14, %15, %cst_14 {dimension_numbers = #tpu.dot_dimension_numbers<[1], [0], [0], [1], [0, 0, 1, 1], [], []>} : vector<16x128xf32>, vector<128x16xf32>, vector<16x16xf32> -> vector<16x16xf32>
    %c0_15 = arith.constant 0 : index
    %c0_16 = arith.constant 0 : index
    %17 = vector.load %arg7[%c0_15, %c0_16] : memref<1x16xf32, #tpu.memory_space<vmem>>, vector<1x16xf32>
    %18 = vector.broadcast %17 : vector<1x16xf32> to vector<16x16xf32>
    %19 = arith.addf %16, %18 : vector<16x16xf32>
    %c0_17 = arith.constant 0 : index
    %c0_18 = arith.constant 0 : index
    %20 = vector.load %arg8[%c0_17, %c0_18] : memref<16x16xf32, #tpu.memory_space<vmem>>, vector<16x16xf32>
    tpu.vector_store %arg8[%c0_17, %c0_18], %19 {strides = array<i32>} : memref<16x16xf32, #tpu.memory_space<vmem>>, vector<16x16xf32>,
    return
  }
  func.func @transform_0(%arg0: i32) -> (i32, i32) {
    %c0_i32 = arith.constant 0 : i32
    %c0_i32_0 = arith.constant 0 : i32
    return %arg0, %c0_i32 : i32, i32
  }
  func.func @transform_1(%arg0: i32) -> (i32, i32) {
    %c0_i32 = arith.constant 0 : i32
    %c0_i32_0 = arith.constant 0 : i32
    %c0_i32_1 = arith.constant 0 : i32
    return %c0_i32, %c0_i32_0 : i32, i32
  }
  func.func @transform_2(%arg0: i32) -> (i32, i32) {
    %c0_i32 = arith.constant 0 : i32
    %c0_i32_0 = arith.constant 0 : i32
    %c0_i32_1 = arith.constant 0 : i32
    return %c0_i32, %c0_i32_0 : i32, i32
  }
  func.func @transform_3(%arg0: i32) -> (i32, i32) {
    %c0_i32 = arith.constant 0 : i32
    %c0_i32_0 = arith.constant 0 : i32
    %c0_i32_1 = arith.constant 0 : i32
    return %c0_i32, %c0_i32_0 : i32, i32
  }
  func.func @transform_4(%arg0: i32) -> (i32, i32) {
    %c0_i32 = arith.constant 0 : i32
    %c0_i32_0 = arith.constant 0 : i32
    %c0_i32_1 = arith.constant 0 : i32
    return %c0_i32, %c0_i32_0 : i32, i32
  }
  func.func @transform_5(%arg0: i32) -> (i32, i32) {
    %c0_i32 = arith.constant 0 : i32
    %c0_i32_0 = arith.constant 0 : i32
    %c0_i32_1 = arith.constant 0 : i32
    return %c0_i32, %c0_i32_0 : i32, i32
  }
  func.func @transform_6(%arg0: i32) -> (i32, i32) {
    %c0_i32 = arith.constant 0 : i32
    %c0_i32_0 = arith.constant 0 : i32
    %c0_i32_1 = arith.constant 0 : i32
    return %c0_i32, %c0_i32_0 : i32, i32
  }
  func.func @transform_7(%arg0: i32) -> (i32, i32) {
    %c0_i32 = arith.constant 0 : i32
    %c0_i32_0 = arith.constant 0 : i32
    return %arg0, %c0_i32 : i32, i32
  }
}

</mosaic_0001>

<bundles_post_ra>
// kernel: tpu_custom_call.1
= control target key start
LH: loop header
LB: loop body
LE: loop exit
PB: predicated region body
PF: predicated region fallthrough
CT: control target
= control target key end

     0   :  { %12 = vsyncpa [#allocation3], 0  ;;  %s795_s0 = inlined_call_operand.vmem [shape: f32[16,32], index: 0, kind: input, shape index: {}]   ;;  %s796_s1 = inlined_call_operand.hbm [shape: f32[32,128], index: 1, kind: input, shape index: {}]   ;;  %s797_s2 = inlined_call_operand.vmem [shape: f32[1,128], index: 2, kind: input, shape index: {}]   ;;  %s798_s3 = inlined_call_operand.vmem [shape: f32[128,128], index: 3, kind: input, shape index: {}]   ;;  %s799_s4 = inlined_call_operand.vmem [shape: f32[1,128], index: 4, kind: input, shape index: {}]   ;;  %s800_s5 = inlined_call_operand.vmem [shape: f32[128,16], index: 5, kind: input, shape index: {}]   ;;  %s801_s6 = inlined_call_operand.vmem [shape: f32[1,16], index: 6, kind: input, shape index: {}]   ;;  %s802_s7 = inlined_call_operand.hbm [shape: f32[16,16], index: 7, kind: output, shape index: {}]  }
   0x1   :  { %13 = vsyncpa [#allocation4], 0  ;;  %s608_s24 = smov [#allocation2]   ;;  %s560_s28 = scalar_lea.hbm %s796_s1, 512 }
   0x2   :  { %s21_s25 = sshll.u32 %s608_s24, 4  ;;  %p561_p0 = scmp.ne.s32.totalorder %s796_s1, %s560_s28  ;;  %s22_s25 = int_to_ptr.vmem [resolvable:$true] %s21_s25 }
   0x3   :  { %p564_p1 = scmp.lt.u32.totalorder %s560_s28, %s796_s1 }
   0x5   :  { %p566_p2 = pnand %p564_p1, %p561_p0 }
   0x7   :  { %569 = shalt.err (!%p566_p2)
}
   0x8   :  { %s570_s10 = scalar_lea.vmem %s22_s25, 512  ;;  %p575_p4 = scmp.lt.s32.totalorder %s22_s25, %s22_s25 }
   0x9   :  { %p571_p3 = scmp.ne.s32.totalorder %s22_s25, %s570_s10  ;;  %p576_p5 = scmp.lt.s32.totalorder %s570_s10, %s570_s10 }
   0xb   :  { %p577_p6 = por %p576_p5, %p575_p4 }
   0xd   :  { %p578_p7 = pnand %p577_p6, %p571_p3 }
   0xf   :  { %581 = shalt.err (!%p578_p7)
}
  0x10   :  { %s609_s11 = smov 128   ;;  %s610_s12 = smov 8  }
  0x11   :  { %27 = dma.hbm_to_vmem [thread:$0]  %s796_s1, 512, %s22_s25, [#allocation3], %s609_s11, %s609_s11, %s610_s12  }
  0x12   :  { %604 = dma.done.wait [#allocation3], 512  }
  0x13   :  { %605 = vsyncadd [#allocation3], 4294966784  ;;  %vm54_vm0 = vcmask 261120   ;;  %v43_v0 = vld [vmem:[#allocation2] sm:$0xff]  ;;  %v44_v1 = vld [vmem:[#allocation2 + $0x8] sm:$0xff]  ;;  %vm336_vm1 = vcmask 130048  }
  0x14   :  { %v45_v2 = vld [vmem:[#allocation2 + $0x10] sm:$0xff]  ;;  %v484_v3 = vpack.c.bf16 %v44_v1, %v43_v0  ;;  %v46_v4 = vld [vmem:[#allocation2 + $0x18] sm:$0xff]  ;;  %v41_v5 = vld [vmem:[%s795_s0] sm:$0xff] }
  0x15   :  { %v488_v6 = vpack.c.bf16 %v46_v4, %v45_v2  ;;  %411 = vmatprep.mubr.msk.f32.mxu0 %vm54_vm0, %v41_v5  ;;  %v138_v7 = vld [vmem:[%s798_s3] sm:$0xff]  ;;  %v139_v8 = vld [vmem:[%s798_s3 + $0x8] sm:$0xff]  ;;  %v140_v9 = vld [vmem:[%s798_s3 + $0x10] sm:$0xff] }
  0x16   :  { %485 = vmatprep.subr.bf16.mxu0 %v484_v3  ;;  %v492_v10 = vpack.c.bf16 %v139_v8, %v138_v7  ;;  %v141_v11 = vld [vmem:[%s798_s3 + $0x18] sm:$0xff]  ;;  %v142_v13 = vld [vmem:[%s798_s3 + $0x20] sm:$0xff]  ;;  %v143_v14 = vld [vmem:[%s798_s3 + $0x28] sm:$0xff] }
  0x17   :  { %487 = vmatpush3.bf16.msra.mxu0 %v484_v3  ;;  %v496_v12 = vpack.c.bf16 %v141_v11, %v140_v9  ;;  %v500_v15 = vpack.c.bf16 %v143_v14, %v142_v13  ;;  %v42_v16 = vld [vmem:[%s795_s0 + $0x8] sm:$0xff]  ;;  %v144_v17 = vld [vmem:[%s798_s3 + $0x30] sm:$0xff]  ;;  %v145_v18 = vld [vmem:[%s798_s3 + $0x38] sm:$0xff] }
  0x18   :  { %489 = vmatprep.subr.bf16.mxu0 %v488_v6  ;;  %493 = vmatprep.subr.bf16.mxu1 %v492_v10  ;;  %v504_v19 = vpack.c.bf16 %v145_v18, %v144_v17  ;;  %v146_v20 = vld [vmem:[%s798_s3 + $0x40] sm:$0xff]  ;;  %v147_v21 = vld [vmem:[%s798_s3 + $0x48] sm:$0xff]  ;;  %v148_v23 = vld [vmem:[%s798_s3 + $0x50] sm:$0xff] }
  0x19   :  { %495 = vmatpush3.bf16.msra.mxu1 %v492_v10  ;;  %v508_v22 = vpack.c.bf16 %v147_v21, %v146_v20  ;;  %v149_v24 = vld [vmem:[%s798_s3 + $0x58] sm:$0xff]  ;;  %v150_v26 = vld [vmem:[%s798_s3 + $0x60] sm:$0xff]  ;;  %v151_v27 = vld [vmem:[%s798_s3 + $0x68] sm:$0xff] }
  0x1a   :  { %497 = vmatprep.subr.bf16.mxu1 %v496_v12  ;;  %v512_v25 = vpack.c.bf16 %v149_v24, %v148_v23  ;;  %v516_v28 = vpack.c.bf16 %v151_v27, %v150_v26  ;;  %v152_v29 = vld [vmem:[%s798_s3 + $0x70] sm:$0xff]  ;;  %v153_v30 = vld [vmem:[%s798_s3 + $0x78] sm:$0xff]  ;;  %v238_v32 = vld [vmem:[%s800_s5] sm:$0xff] }
  0x1b   :  { %491 = vmatpush3.bf16.msra.mxu0 %v488_v6  ;;  %v520_v31 = vpack.c.bf16 %v153_v30, %v152_v29  ;;  %v239_v33 = vld [vmem:[%s800_s5 + $0x8] sm:$0xff]  ;;  %v240_v34 = vld [vmem:[%s800_s5 + $0x10] sm:$0xff]  ;;  %v241_v36 = vld [vmem:[%s800_s5 + $0x18] sm:$0xff] }
  0x1c   :  { %v524_v35 = vpack.c.bf16 %v239_v33, %v238_v32  ;;  %v528_v37 = vpack.c.bf16 %v241_v36, %v240_v34  ;;  %v242_v38 = vld [vmem:[%s800_s5 + $0x20] sm:$0xff]  ;;  %v243_v39 = vld [vmem:[%s800_s5 + $0x28] sm:$0xff]  ;;  %v244_v41 = vld [vmem:[%s800_s5 + $0x30] sm:$0xff] }
  0x1d   :  { %499 = vmatpush3.bf16.msra.mxu1 %v496_v12  ;;  %v532_v40 = vpack.c.bf16 %v243_v39, %v242_v38  ;;  %v245_v42 = vld [vmem:[%s800_s5 + $0x38] sm:$0xff]  ;;  %v246_v44 = vld [vmem:[%s800_s5 + $0x40] sm:$0xff]  ;;  %v247_v45 = vld [vmem:[%s800_s5 + $0x48] sm:$0xff] }
  0x1e   :  { %412 = vmatmul.mubr.msk.f32.vlgmr.msra.gmra.mrb[0].mxu0 %vm54_vm0, %v42_v16  ;;  %501 = vmatprep.subr.bf16.mxu1 %v500_v15  ;;  %v536_v43 = vpack.c.bf16 %v245_v42, %v244_v41  ;;  %v540_v46 = vpack.c.bf16 %v247_v45, %v246_v44  ;;  %v248_v47 = vld [vmem:[%s800_s5 + $0x50] sm:$0xff]  ;;  %v249_v48 = vld [vmem:[%s800_s5 + $0x58] sm:$0xff]  ;;  %v250_v50 = vld [vmem:[%s800_s5 + $0x60] sm:$0xff] }
  0x1f   :  { %525 = vmatprep.subr.bf16.mxu0 %v524_v35  ;;  %v544_v49 = vpack.c.bf16 %v249_v48, %v248_v47  ;;  %v251_v51 = vld [vmem:[%s800_s5 + $0x68] sm:$0xff]  ;;  %v356_v53 = vld [vmem:[%s797_s2] ss:$0 sm:$0xff]  ;;  %v252_v60 = vld [vmem:[%s800_s5 + $0x70] sm:$0xff] }
  0x20   :  { %527 = vmatpush3.bf16.msra.mxu0 %v524_v35  ;;  %v548_v52 = vpack.c.bf16 %v251_v51, %v250_v50  ;;  %v253_v61 = vld [vmem:[%s800_s5 + $0x78] sm:$0xff]  ;;  %v359_v63 = vld [vmem:[%s799_s4] ss:$0 sm:$0xff]  ;;  %s611_s5 = smov [#allocation5]  }
  0x21   :  { %503 = vmatpush3.bf16.msra.mxu1 %v500_v15  ;;  %529 = vmatprep.subr.bf16.mxu0 %v528_v37  ;;  %v552_v62 = vpack.c.bf16 %v253_v61, %v252_v60  ;;  %v360_v6 = vld [vmem:[%s801_s6] ss:$0 sm:$0xff]  ;;  %s344_s17 = sshll.u32 %s611_s5, 4  ;;  %s345_s17 = int_to_ptr.vmem [resolvable:$true] %s344_s17 }
  0x22   :  { %505 = vmatprep.subr.bf16.mxu1 %v504_v19  ;;  %s582_s4 = scalar_lea.vmem %s345_s17, 256  ;;  %p587_p9 = scmp.lt.s32.totalorder %s345_s17, %s345_s17 }
  0x23   :  { %p583_p8 = scmp.ne.s32.totalorder %s345_s17, %s582_s4  ;;  %p588_p10 = scmp.lt.s32.totalorder %s582_s4, %s582_s4 }
  0x24   :  { %531 = vmatpush3.bf16.msra.mxu0 %v528_v37 }
  0x25   :  { %507 = vmatpush3.bf16.msra.mxu1 %v504_v19  ;;  %533 = vmatprep.subr.bf16.mxu0 %v532_v40  ;;  %p589_p11 = por %p588_p10, %p587_p9 }
  0x26   :  { %509 = vmatprep.subr.bf16.mxu1 %v508_v22 }
  0x27   :  { %p590_p12 = pnand %p589_p11, %p583_p8 }
  0x28   :  { %535 = vmatpush3.bf16.msra.mxu0 %v532_v40 }
  0x29   :  { %511 = vmatpush3.bf16.msra.mxu1 %v508_v22  ;;  %537 = vmatprep.subr.bf16.mxu0 %v536_v43 }
  0x2a   :  { %513 = vmatprep.subr.bf16.mxu1 %v512_v25 }
  0x2c   :  { %539 = vmatpush3.bf16.msra.mxu0 %v536_v43 }
  0x2d   :  { %515 = vmatpush3.bf16.msra.mxu1 %v512_v25  ;;  %541 = vmatprep.subr.bf16.mxu0 %v540_v46 }
  0x2e   :  { %517 = vmatprep.subr.bf16.mxu1 %v516_v28 }
  0x30   :  { %543 = vmatpush3.bf16.msra.mxu0 %v540_v46 }
  0x31   :  { %519 = vmatpush3.bf16.msra.mxu1 %v516_v28  ;;  %545 = vmatprep.subr.bf16.mxu0 %v544_v49 }
  0x32   :  { %521 = vmatprep.subr.bf16.mxu1 %v520_v31 }
  0x34   :  { %547 = vmatpush3.bf16.msra.mxu0 %v544_v49 }
  0x35   :  { %523 = vmatpush3.bf16.msra.mxu1 %v520_v31  ;;  %549 = vmatprep.subr.bf16.mxu0 %v548_v52 }
  0x38   :  { %551 = vmatpush3.bf16.msra.mxu0 %v548_v52 }
  0x39   :  { %553 = vmatprep.subr.bf16.mxu0 %v552_v62 }
  0x3c   :  { %555 = vmatpush3.bf16.msra.mxu0 %v552_v62 }
  0xf1   :  { %v413_v54 = vpop.f32.mrb[0].mxu0 }
  0xf2   :  { %v133_v55 = vadd.f32 %v413_v54, %v356_v53  ;;  %v127_v56 = vpop.f32.mrb[1].mxu0 }
  0xf3   :  { %v128_v57 = vadd.f32 %v356_v53, %v127_v56 }
  0xf4   :  { %v137_v59 = vmax.f32 %v133_v55, 0.0 }
  0xf5   :  { %v136_v58 = vmax.f32 %v128_v57, 0.0 }
  0xf7   :  { %446 = vmatprep.mubr.f32.mxu1 %v136_v58 }
  0xf8   :  { %447 = vmatmul.mubr.f32.vlgmr.msra.gmra.mrb[0].mxu1 %v137_v59 }
 0x1cb   :  { %v448_v0 = vpop.f32.mrb[0].mxu1 }
 0x1cc   :  { %v233_v1 = vadd.f32 %v448_v0, %v359_v63  ;;  %v227_v2 = vpop.f32.mrb[1].mxu1 }
 0x1cd   :  { %v228_v3 = vadd.f32 %v359_v63, %v227_v2 }
 0x1ce   :  { %v237_v5 = vmax.f32 %v233_v1, 0.0 }
 0x1cf   :  { %v236_v4 = vmax.f32 %v228_v3, 0.0 }
 0x1d1   :  { %481 = vmatprep.mubr.f32.mxu0 %v236_v4 }
 0x1d2   :  { %482 = vmatmul.mubr.f32.vlgmr.msra.gmra.mrb[2].mxu0 %v237_v5 }
 0x2a5   :  { %v483_v7 = vpop.f32.mrb[2].mxu0 }
 0x2a6   :  { %v333_v8 = vadd.f32 %v483_v7, %v360_v6  ;;  %v327_v9 = vpop.f32.mrb[3].mxu0 }
 0x2a7   :  { %v328_v10 = vadd.f32 %v360_v6, %v327_v9 }
 0x2a8   :  { %338 = vst.msk [vmem:[#allocation5 + $0x8] sm:$0xff] %vm336_vm1, %v333_v8 }
 0x2a9   :  { %337 = vst.msk [vmem:[#allocation5] sm:$0xff] %vm336_vm1, %v328_v10 }
 0x2aa   :  { %593 = shalt.err (!%p590_p12)
}
 0x2ab   :  { %s594_s6 = scalar_lea.hbm %s802_s7, 256 }
 0x2ac   :  { %p595_p13 = scmp.ne.s32.totalorder %s802_s7, %s594_s6  ;;  %p598_p0 = scmp.lt.u32.totalorder %s594_s6, %s802_s7 }
 0x2ae   :  { %p600_p1 = pnand %p598_p0, %p595_p13 }
 0x2b0   :  { %603 = shalt.err (!%p600_p1)
}
 0x2b1   :  { %350 = dma.vmem_to_hbm [thread:$0]  %s345_s17, 256, %s802_s7, [#allocation4], %s609_s11, %s609_s11, %s610_s12  }
 0x2b2   :  { %606 = dma.done.wait [#allocation4], 256  }
 0x2b3   :  { %607 = vsyncadd [#allocation4], 4294967040 }
 0x2b4   :  { %354 = vsyncpa [#allocation3], 1 }
 0x2b5   :  { %355 = vsyncpa [#allocation4], 1 }

</bundles_post_ra>
